<compile_context>
chip_gen: v6e
topology: v6e:2x2x1
jax: 0.10.0
libtpu: 0.0.40
codegen_flags: <defaults>
</compile_context>

<pallas_src>
import jax
import jax.numpy as jnp
from jax.experimental import pallas as pl
from jax.experimental.pallas import tpu as pltpu

IN_FEATURES = 3
OUT_FEATURES = 1  # kernels below are specialized to out_features == 1


def _xw_store(w, xT_ref, o_ref):
    # o[s, b] = sum_k w[s, k] * x[b, k]
    # K (=3) unrolled VPU multiply-adds; (S,1)*(1,B) broadcasts -> (S,B).
    # No MXU (K=3 would waste >97% of the contraction dim), no XLU reduce.
    K = xT_ref.shape[0]
    acc = w[:, 0:1] * xT_ref[0:1, :]
    for k in range(1, K):
        acc = acc + w[:, k:k + 1] * xT_ref[k:k + 1, :]
    o_ref[...] = acc                                  # lane-dense (S, B) store


def _sampled_kernel(mu_ref, rho_ref, eps_ref, xT_ref, o_ref):
    # Fused weight sampling: sigma = log1p(exp(rho)) (matches torch reference,
    # including its overflow behaviour for very large rho).
    sigma = jnp.log1p(jnp.exp(rho_ref[...]))          # (1, K), EUP slot
    w = mu_ref[...] + sigma * eps_ref[...]            # (S, K), VPU
    _xw_store(w, xT_ref, o_ref)


def _mean_kernel(mu_ref, xT_ref, o_ref):
    # Eval path: weight = mu; rho / eps are never touched or even passed.
    _xw_store(mu_ref[...], xT_ref, o_ref)


_VMEM_SPEC = pl.BlockSpec(memory_space=pltpu.MemorySpace.VMEM)


@jax.jit
def _bayes_forward_sampled(mu, rho, eps, xT):
    """out[s, b] = sum_k (mu + softplus(rho) * eps[s])[k] * x[b, k]."""
    S = eps.shape[0]
    B = xT.shape[1]
    return pl.pallas_call(
        _sampled_kernel,
        out_shape=jax.ShapeDtypeStruct((S, B), jnp.float32),
        in_specs=[_VMEM_SPEC, _VMEM_SPEC, _VMEM_SPEC, _VMEM_SPEC],
        out_specs=_VMEM_SPEC,
    )(mu, rho, eps, xT)


@jax.jit
def _bayes_forward_mean(mu, xT):
    """out[0, b] = sum_k mu[0, k] * x[b, k]  (eval path)."""
    B = xT.shape[1]
    return pl.pallas_call(
        _mean_kernel,
        out_shape=jax.ShapeDtypeStruct((1, B), jnp.float32),
        in_specs=[_VMEM_SPEC, _VMEM_SPEC],
        out_specs=_VMEM_SPEC,
    )(mu, xT)


class BayesianNetwork:
    """JAX/Pallas port of the PyTorch BayesianNetwork (single BayesianLinear(3, 1))."""

    def __init__(self, key):
        k_mu, k_rho = jax.random.split(key)
        # Deterministic synthetic init (module __init__ uses zeros; small
        # random values used here so the kernel output is non-trivial).
        self.weight_mu = 0.1 * jax.random.normal(
            k_mu, (OUT_FEATURES, IN_FEATURES), dtype=jnp.float32)
        self.weight_rho = -3.0 + 0.1 * jax.random.normal(
            k_rho, (OUT_FEATURES, IN_FEATURES), dtype=jnp.float32)
        # TODO(synk): log_prior / log_variational_posterior / sample_elbo loss
        # bookkeeping (training-only scalars) are not part of the forward value
        # and are not computed here.

    def forward(self, x, sample=False, eps_key=None):
        x = x.astype(jnp.float32)
        xT = x.T  # (K, B): batch on lanes; transpose done once, outside kernel.
        if sample:
            eps = jax.random.normal(
                eps_key, (OUT_FEATURES, IN_FEATURES), dtype=jnp.float32)
            out_sb = _bayes_forward_sampled(
                self.weight_mu, self.weight_rho, eps, xT)       # (1, B)
        else:
            eps = None  # no noise drawn on the eval path
            out_sb = _bayes_forward_mean(self.weight_mu, xT)    # (1, B)
        return out_sb.T, eps                                    # (B, 1), eps

    __call__ = forward

    def forward_mc(self, x, samples, eps_key):
        """S Monte-Carlo weight samples, ONE kernel call -> (S, B, 1)."""
        x = x.astype(jnp.float32)
        xT = x.T                                                 # (K, B)
        eps = jax.random.normal(
            eps_key, (samples, IN_FEATURES), dtype=jnp.float32)  # (S, K)
        out_sb = _bayes_forward_sampled(
            self.weight_mu, self.weight_rho, eps, xT)            # (S, B)
        return out_sb[:, :, None], eps                           # (S, B, 1)


def _reference_forward(x, mu, rho, eps):
    if eps is None:
        w = mu
    else:
        sigma = jnp.log1p(jnp.exp(rho))
        w = mu + sigma * eps
    return x @ w.T


if __name__ == "__main__":
    key = jax.random.PRNGKey(0)
    k_net, k_x, k_eps, k_mc = jax.random.split(key, 4)

    net = BayesianNetwork(k_net)

    # batch of 10 (matches train_batch_size in the reference code), 3 features
    B = 10
    x = jax.random.normal(k_x, (B, IN_FEATURES), dtype=jnp.float32)

    # eval path (sample=False): weight = mu
    out_eval, _ = net(x, sample=False)
    out_eval = jax.block_until_ready(out_eval)
    ref_eval = _reference_forward(x, net.weight_mu, net.weight_rho, None)

    # sampled path (sample=True): weight = mu + softplus(rho) * eps
    out_samp, eps = net(x, sample=True, eps_key=k_eps)
    out_samp = jax.block_until_ready(out_samp)
    ref_samp = _reference_forward(x, net.weight_mu, net.weight_rho, eps)

    # batched Monte-Carlo path (S weight samples, one fused kernel call)
    S = 4
    out_mc, eps_mc = net.forward_mc(x, S, k_mc)
    out_mc = jax.block_until_ready(out_mc)
    ref_mc = jnp.stack([
        _reference_forward(x, net.weight_mu, net.weight_rho, eps_mc[s][None, :])
        for s in range(S)
    ])

    assert out_eval.shape == (B, OUT_FEATURES)
    assert out_samp.shape == (B, OUT_FEATURES)
    assert out_mc.shape == (S, B, OUT_FEATURES)
    assert jnp.allclose(out_eval, ref_eval, atol=1e-5, rtol=1e-5)
    assert jnp.allclose(out_samp, ref_samp, atol=1e-5, rtol=1e-5)
    assert jnp.allclose(out_mc, ref_mc, atol=1e-5, rtol=1e-5)

    print("KERNEL_OK")
</pallas_src>

<mosaic_0001>
module attributes {stable_mosaic.version = 11 : i64} {
  func.func @_mean_kernel(%arg0: memref<1x3xf32, #tpu.memory_space<vmem>>, %arg1: memref<3x10xf32, #tpu.memory_space<vmem>>, %arg2: memref<1x10xf32, #tpu.memory_space<vmem>>) attributes {dimension_semantics = [], scalar_prefetch = 0 : i64, scratch_operands = 0 : i64, tpu.core_type = #tpu.core_type<tc>} {
    %c0 = arith.constant 0 : index
    %c0_0 = arith.constant 0 : index
    %0 = vector.load %arg0[%c0, %c0_0] : memref<1x3xf32, #tpu.memory_space<vmem>>, vector<1x3xf32>
    %1 = vector.extract_strided_slice %0 {offsets = [0, 0], sizes = [1, 1], strides = [1, 1]} : vector<1x3xf32> to vector<1x1xf32>
    %c0_1 = arith.constant 0 : index
    %c0_2 = arith.constant 0 : index
    %2 = vector.load %arg1[%c0_1, %c0_2] : memref<3x10xf32, #tpu.memory_space<vmem>>, vector<1x10xf32>
    %3 = vector.broadcast %1 : vector<1x1xf32> to vector<1x10xf32>
    %4 = arith.mulf %3, %2 : vector<1x10xf32>
    %5 = vector.extract_strided_slice %0 {offsets = [0, 1], sizes = [1, 1], strides = [1, 1]} : vector<1x3xf32> to vector<1x1xf32>
    %c1 = arith.constant 1 : index
    %c0_3 = arith.constant 0 : index
    %6 = vector.load %arg1[%c1, %c0_3] : memref<3x10xf32, #tpu.memory_space<vmem>>, vector<1x10xf32>
    %7 = vector.broadcast %5 : vector<1x1xf32> to vector<1x10xf32>
    %8 = arith.mulf %7, %6 : vector<1x10xf32>
    %9 = arith.addf %4, %8 : vector<1x10xf32>
    %10 = vector.extract_strided_slice %0 {offsets = [0, 2], sizes = [1, 1], strides = [1, 1]} : vector<1x3xf32> to vector<1x1xf32>
    %c2 = arith.constant 2 : index
    %c0_4 = arith.constant 0 : index
    %11 = vector.load %arg1[%c2, %c0_4] : memref<3x10xf32, #tpu.memory_space<vmem>>, vector<1x10xf32>
    %12 = vector.broadcast %10 : vector<1x1xf32> to vector<1x10xf32>
    %13 = arith.mulf %12, %11 : vector<1x10xf32>
    %14 = arith.addf %9, %13 : vector<1x10xf32>
    %c0_5 = arith.constant 0 : index
    %c0_6 = arith.constant 0 : index
    %15 = vector.load %arg2[%c0_5, %c0_6] : memref<1x10xf32, #tpu.memory_space<vmem>>, vector<1x10xf32>
    tpu.vector_store %arg2[%c0_5, %c0_6], %14 {strides = array<i32>} : memref<1x10xf32, #tpu.memory_space<vmem>>, vector<1x10xf32>,
    return
  }
}

</mosaic_0001>

<bundles_post_ra>
// kernel: _bayes_forward_mean.1
= control target key start
LH: loop header
LB: loop body
LE: loop exit
PB: predicated region body
PF: predicated region fallthrough
CT: control target
= control target key end

     0   :  { %7 = vsyncpa [#allocation3], 0  ;;  %s194_s0 = inlined_call_operand.hbm [shape: f32[1,3], index: 0, kind: input, shape index: {}]   ;;  %s195_s1 = inlined_call_operand.hbm [shape: f32[3,10], index: 1, kind: input, shape index: {}]   ;;  %s196_s2 = inlined_call_operand.hbm [shape: f32[1,10], index: 2, kind: output, shape index: {}]  }
   0x1   :  { %8 = vsyncpa [#allocation6], 0 }
   0x2   :  { %9 = vsyncpa [#allocation4], 0  ;;  %s164_s9 = smov [#allocation2]   ;;  %s165_s11 = smov [#allocation5]  }
   0x3   :  { %s16_s10 = sshll.u32 %s164_s9, 4  ;;  %s26_s12 = sshll.u32 %s165_s11, 4  ;;  %s17_s10 = int_to_ptr.vmem [resolvable:$true] %s16_s10  ;;  %s27_s12 = int_to_ptr.vmem [resolvable:$true] %s26_s12 }
   0x4   :  { %s106_s13 = scalar_lea.vmem %s17_s10, 16  ;;  %s110_s14 = scalar_lea.vmem %s17_s10, 32 }
   0x5   :  { %p107_p0 = scmp.ne.s32.totalorder %s17_s10, %s106_s13  ;;  %p111_p1 = scmp.lt.s32.totalorder %s17_s10, %s17_s10 }
   0x6   :  { %p112_p2 = scmp.lt.s32.totalorder %s110_s14, %s106_s13 }
   0x8   :  { %p113_p3 = por %p112_p2, %p111_p1 }
   0xa   :  { %p114_p4 = pnand %p113_p3, %p107_p0 }
   0xc   :  { %117 = shalt.err (!%p114_p4)
}
   0xd   :  { %19 = dma.hbm_to_vmem [thread:$0]  %s194_s0, 16, %s17_s10, [#allocation3]  }
   0xe   :  { %s126_s17 = scalar_lea.vmem %s27_s12, 64  ;;  %p131_p6 = scmp.lt.s32.totalorder %s27_s12, %s27_s12 }
   0xf   :  { %p127_p5 = scmp.ne.s32.totalorder %s27_s12, %s126_s17  ;;  %p132_p7 = scmp.lt.s32.totalorder %s126_s17, %s126_s17 }
  0x11   :  { %p133_p8 = por %p132_p7, %p131_p6 }
  0x13   :  { %p134_p9 = pnand %p133_p8, %p127_p5 }
  0x15   :  { %137 = shalt.err (!%p134_p9)
}
  0x16   :  { %29 = dma.hbm_to_vmem [thread:$0]  %s195_s1, 64, %s27_s12, [#allocation6]  }
  0x17   :  { %158 = dma.done.wait [#allocation3], 16  }
  0x18   :  { %159 = vsyncadd [#allocation3], 4294967280 }
  0x19   :  { %160 = dma.done.wait [#allocation6], 64  }
  0x1a   :  { %161 = vsyncadd [#allocation6], 4294967232  ;;  %v166_v0 = vmov 0   ;;  %v167_v1 = vmov 2   ;;  %v36_v2 = vld [vmem:[#allocation2] sm:$0x1]  ;;  %v43_v4 = vlaneseq }
  0x1b   :  { %94 = vset.pattern.permute.xlu0 %v166_v0  ;;  %96 = vset.pattern.permute.xlu1 %v167_v1  ;;  %v168_v3 = vmov 1   ;;  %v37_v11 = vld [vmem:[#allocation5] sm:$0x1]  ;;  %v48_v12 = vld [vmem:[#allocation5 + $0x1] sm:$0x1]  ;;  %s169_s0 = smov [#allocation7]  }
  0x1c   :  { %40 = vperm.xlu0 %94, %v36_v2   ;;  %61 = vperm.xlu1 %96, %v36_v2   ;;  %v44_v5 = vshrl.u32 %v43_v4, 7  ;;  %v59_v14 = vld [vmem:[#allocation5 + $0x2] sm:$0x1]  ;;  %s78_s1 = sshll.u32 %s169_s0, 4  ;;  %vm70_vm0 = vcmask 73728   ;;  %s79_s1 = int_to_ptr.vmem [resolvable:$true] %s78_s1 }
  0x1d   :  { %s138_s20 = scalar_lea.vmem %s79_s1, 16  ;;  %s142_s21 = scalar_lea.vmem %s79_s1, 32 }
  0x1e   :  { %v45_v6 = vsub.s32 0, %v44_v5  ;;  %p139_p10 = scmp.ne.s32.totalorder %s79_s1, %s138_s20  ;;  %p143_p11 = scmp.lt.s32.totalorder %s79_s1, %s79_s1 }
  0x1f   :  { %p144_p12 = scmp.lt.s32.totalorder %s142_s21, %s138_s20 }
  0x20   :  { %95 = vset.pattern.permute.xlu0 %v168_v3 }
  0x21   :  { %50 = vperm.xlu0 %95, %v36_v2   ;;  %p145_p13 = por %p144_p12, %p143_p11 }
  0x23   :  { %p146_p0 = pnand %p145_p13, %p139_p10 }
  0x25   :  { %97 = vset.pattern.permute.xlu0 %v167_v1 }
  0x97   :  { %v41_v7 = vpop.permute.xlu0 %40  ;;  %v62_v8 = vpop.permute.xlu1 %61 }
  0x98   :  { %v46_v9 = vrot.slane %v41_v7, %v45_v6  ;;  %v67_v10 = vrot.slane %v62_v8, %v45_v6 }
  0x9a   :  { %v47_v16 = vmul.f32 %v46_v9, %v37_v11  ;;  %v68_v18 = vmul.f32 %v67_v10, %v59_v14 }
  0x9c   :  { %v51_v13 = vpop.permute.xlu0 %50 }
  0x9d   :  { %v56_v15 = vrot.slane %v51_v13, %v45_v6 }
  0x9f   :  { %v57_v17 = vmul.f32 %v56_v15, %v48_v12 }
  0xa1   :  { %v58_v19 = vadd.f32 %v57_v17, %v47_v16 }
  0xa3   :  { %v69_v20 = vadd.f32 %v68_v18, %v58_v19 }
  0xa5   :  { %71 = vst.msk [vmem:[#allocation7] sm:$0x1] %vm70_vm0, %v69_v20 }
  0xa6   :  { %149 = shalt.err (!%p146_p0)
}
  0xa7   :  { %81 = dma.vmem_to_hbm [thread:$0]  %s79_s1, 16, %s196_s2, [#allocation4]  }
  0xa8   :  { %162 = dma.done.wait [#allocation4], 16  }
  0xa9   :  { %163 = vsyncadd [#allocation4], 4294967280 }
  0xaa   :  { %85 = vsyncpa [#allocation3], 1 }
  0xab   :  { %86 = vsyncpa [#allocation6], 1 }
  0xac   :  { %87 = vsyncpa [#allocation4], 1 }

</bundles_post_ra>
